<compile_context>
chip_gen: v7x
topology: tpu7x:2x2x1
jax: 0.10.0
libtpu: 0.0.40
codegen_flags: <defaults>
</compile_context>

<pallas_src>
import numpy as np
import jax
import jax.numpy as jnp
from jax.experimental import pallas as pl
from jax.experimental.pallas import tpu as pltpu


# ----------------------------------------------------------------------------
# Trace-time (numpy) constants
# ----------------------------------------------------------------------------
def _interp_weight_matrix_np(out_size: int, in_size: int) -> np.ndarray:
    """Linear-interp weight matrix matching torch.nn.functional.interpolate(
    mode='linear', align_corners=False).  Shape (in_size, out_size) so that
    values(E/2, in) @ W -> interpolated(E/2, out).  Pure numpy -> becomes a
    compile-time constant."""
    j = np.arange(out_size, dtype=np.float64)
    src = np.maximum((j + 0.5) * (in_size / out_size) - 0.5, 0.0)  # clamp >= 0
    i0 = np.minimum(np.floor(src).astype(np.int64), in_size - 1)
    i1 = np.minimum(i0 + 1, in_size - 1)
    lam = src - i0
    w = np.zeros((in_size, out_size), dtype=np.float64)
    cols = np.arange(out_size)
    np.add.at(w, (i0, cols), 1.0 - lam)
    np.add.at(w, (i1, cols), lam)
    return w.astype(np.float32)


# ----------------------------------------------------------------------------
# Pallas kernel: one MXU matmul, one full unmasked lane-dense store.
# ----------------------------------------------------------------------------
def _pos_enc_kernel(a_ref, w_ref, out_ref):
    # a_ref   : (E, in_h+in_w)   block-diagonal embeddings
    # w_ref   : (in_h+in_w, H*W) interp weights with broadcast folded in
    # out_ref : (E, H*W)         lane-dense output slab
    out_ref[...] = jnp.dot(
        a_ref[...], w_ref[...],
        preferred_element_type=jnp.float32).astype(out_ref.dtype)


# ----------------------------------------------------------------------------
# Wrappers
# ----------------------------------------------------------------------------
def compute_positional_encoding(row_embed, col_embed, H: int, W: int):
    """Compute the (E, H, W) encoding.  Depends only on the embeddings and the
    target spatial size (not on x or B) -> hoist/cache this per weight update."""
    e_half, in_h = row_embed.shape[1], row_embed.shape[2]
    in_w = col_embed.shape[2]
    assert col_embed.shape[1] == e_half, "row/col embed channel mismatch"
    embed_dim = 2 * e_half
    HW = H * W
    dtype = row_embed.dtype

    # Compile-time constant: stacked interp weights with the over-W / over-H
    # broadcast folded in (lane axis = H*W).
    wrow = _interp_weight_matrix_np(H, in_h)                 # (in_h, H)
    wcol = _interp_weight_matrix_np(W, in_w)                 # (in_w, W)
    wcomb_np = np.concatenate(
        [np.repeat(wrow, W, axis=1),                         # col h*W+w -> wrow[:, h]
         np.tile(wcol, (1, H))], axis=0)                     # col h*W+w -> wcol[:, w]
    wcomb = jnp.asarray(wcomb_np, dtype=dtype)               # (in_h+in_w, HW)

    # Block-diagonal embedding matrix -> one fused matmul emits both halves.
    a = jnp.zeros((embed_dim, in_h + in_w), dtype=dtype)
    a = a.at[:e_half, :in_h].set(row_embed[0])
    a = a.at[e_half:, in_h:].set(col_embed[0])

    pos_flat = pl.pallas_call(
        _pos_enc_kernel,
        out_shape=jax.ShapeDtypeStruct((embed_dim, HW), dtype),
        in_specs=[
            pl.BlockSpec(memory_space=pltpu.MemorySpace.VMEM),
            pl.BlockSpec(memory_space=pltpu.MemorySpace.VMEM),
        ],
        out_specs=pl.BlockSpec(memory_space=pltpu.MemorySpace.VMEM),
    )(a, wcomb)

    return pos_flat.reshape(embed_dim, H, W)


def positional_encoding_2d(x, row_embed, col_embed):
    """x: (B, C, H, W) NCHW.  row_embed: (1, E/2, height), col_embed: (1, E/2, width).
    Returns pos: (B, E, H, W), identical across batch (same as the PyTorch module)."""
    B, _, H, W = x.shape
    pos = compute_positional_encoding(row_embed, col_embed, H, W)   # (E, H, W)
    # Batch repeat outside the kernel: encoding is batch-invariant.
    return jnp.broadcast_to(pos[None], (B,) + pos.shape)


# ----------------------------------------------------------------------------
# Independent reference (direct gather + lerp, NOT the weight-matrix path)
# ----------------------------------------------------------------------------
def _interp_ref_np(vals: np.ndarray, out_size: int) -> np.ndarray:
    """F.interpolate(mode='linear', align_corners=False) on (E/2, in) values,
    implemented directly per output index (independent of the one-hot weight
    construction used by the kernel)."""
    in_size = vals.shape[1]
    out = np.empty((vals.shape[0], out_size), dtype=np.float64)
    for j in range(out_size):
        src = max((j + 0.5) * (in_size / out_size) - 0.5, 0.0)
        i0 = min(int(np.floor(src)), in_size - 1)
        i1 = min(i0 + 1, in_size - 1)
        lam = src - i0
        out[:, j] = (1.0 - lam) * vals[:, i0] + lam * vals[:, i1]
    return out


def _reference_np(x_shape, row_embed, col_embed) -> np.ndarray:
    B, _, H, W = x_shape
    row_np = np.asarray(row_embed)[0].astype(np.float64)
    col_np = np.asarray(col_embed)[0].astype(np.float64)
    row_i = _interp_ref_np(row_np, H)                        # (E/2, H)
    col_i = _interp_ref_np(col_np, W)                        # (E/2, W)
    row_b = np.broadcast_to(row_i[:, :, None], row_i.shape + (W,))
    col_b = np.broadcast_to(col_i[:, None, :], (col_i.shape[0], H, W))
    pos = np.concatenate([row_b, col_b], axis=0)             # (E, H, W)
    return np.broadcast_to(pos[None], (B,) + pos.shape)


if __name__ == "__main__":
    embed_dim, height, width = 32, 8, 8                      # module __init__ params
    B, C, H, W = 2, 4, 16, 16                                # input shape (NCHW), upsampling case

    key = jax.random.PRNGKey(0)
    k1, k2, k3 = jax.random.split(key, 3)
    row_embed = jax.random.normal(k1, (1, embed_dim // 2, height), jnp.float32)
    col_embed = jax.random.normal(k2, (1, embed_dim // 2, width), jnp.float32)
    x = jax.random.normal(k3, (B, C, H, W), jnp.float32)

    out = positional_encoding_2d(x, row_embed, col_embed)
    out = jax.block_until_ready(out)

    ref = _reference_np(x.shape, row_embed, col_embed)
    assert out.shape == (B, embed_dim, H, W)
    assert np.allclose(np.asarray(out), ref, atol=1e-5, rtol=1e-5)

    print("KERNEL_OK")
</pallas_src>

<mosaic_0001>
module attributes {stable_mosaic.version = 11 : i64} {
  func.func @_pos_enc_kernel(%arg0: memref<32x16xf32, #tpu.memory_space<vmem>>, %arg1: memref<16x256xf32, #tpu.memory_space<vmem>>, %arg2: memref<32x256xf32, #tpu.memory_space<vmem>>) attributes {dimension_semantics = [], scalar_prefetch = 0 : i64, scratch_operands = 0 : i64, tpu.core_type = #tpu.core_type<tc>} {
    %c0 = arith.constant 0 : index
    %c0_0 = arith.constant 0 : index
    %0 = vector.load %arg0[%c0, %c0_0] : memref<32x16xf32, #tpu.memory_space<vmem>>, vector<32x16xf32>
    %c0_1 = arith.constant 0 : index
    %c0_2 = arith.constant 0 : index
    %1 = vector.load %arg1[%c0_1, %c0_2] : memref<16x256xf32, #tpu.memory_space<vmem>>, vector<16x256xf32>
    %cst = arith.constant dense<0.000000e+00> : vector<32x256xf32>
    %2 = tpu.matmul %0, %1, %cst {dimension_numbers = #tpu.dot_dimension_numbers<[1], [0], [0], [1], [0, 0, 1, 1], [], []>} : vector<32x16xf32>, vector<16x256xf32>, vector<32x256xf32> -> vector<32x256xf32>
    %c0_3 = arith.constant 0 : index
    %c0_4 = arith.constant 0 : index
    %3 = vector.load %arg2[%c0_3, %c0_4] : memref<32x256xf32, #tpu.memory_space<vmem>>, vector<32x256xf32>
    tpu.vector_store %arg2[%c0_3, %c0_4], %2 {strides = array<i32>} : memref<32x256xf32, #tpu.memory_space<vmem>>, vector<32x256xf32>,
    return
  }
}

</mosaic_0001>

<bundles_post_ra>
// kernel: tpu_custom_call.1
= control target key start
LH: loop header
LB: loop body
LE: loop exit
PB: predicated region body
PF: predicated region fallthrough
CT: control target
= control target key end

     0   :  { %v184_v5 = vmov 0.0   ;;  %s239_s0 = inlined_call_operand.vmem [shape: f32[32,16], index: 0, kind: input, shape index: {}]   ;;  %s240_s1 = inlined_call_operand.vmem [shape: f32[16,256], index: 1, kind: input, shape index: {}]   ;;  %s241_s2 = inlined_call_operand.hbm [shape: f32[32,256], index: 2, kind: output, shape index: {}]  }
   0x1   :  { %v17_v0 = vld [vmem:[%s240_s1 + $0x8] sm:$0xff]  ;;  %v19_v1 = vld [vmem:[%s240_s1 + $0x18] sm:$0xff]  ;;  %v16_v2 = vld [vmem:[%s240_s1] sm:$0xff]  ;;  %97 = vmatprep.mubr.f32.mxu0 %v184_v5  ;;  %109 = vmatprep.mubr.f32.mxu1 %v184_v5 }
   0x2   :  { %v150_v3 = vpack.c.bf16 %v19_v1, %v17_v0  ;;  %v18_v4 = vld [vmem:[%s240_s1 + $0x10] sm:$0xff] }
   0x3   :  { %v152_v6 = vpack.c.bf16 %v18_v4, %v16_v2 }
   0x4   :  { %7 = vsyncpa [#allocation3], 0  ;;  %151 = vmatprep.subr.bf16.mxu0 %v150_v3  ;;  %154 = vmatprep.subr.bf16.mxu1 %v150_v3  ;;  %v12_v7 = vld [vmem:[%s239_s0] sm:$0xff]  ;;  %vm20_vm0 = vcmask 130048   ;;  %v14_v8 = vld [vmem:[%s239_s0 + $0x10] sm:$0xff]  ;;  %s185_s24 = smov [#allocation2]  }
   0x5   :  { %153 = vmatpush1.bf16.msra.mxu0 %v152_v6  ;;  %155 = vmatpush1.bf16.msra.mxu1 %v152_v6  ;;  %v13_v9 = vld [vmem:[%s239_s0 + $0x8] sm:$0xff]  ;;  %v15_v10 = vld [vmem:[%s239_s0 + $0x18] sm:$0xff]  ;;  %s135_s25 = sshll.u32 %s185_s24, 4  ;;  %s136_s25 = int_to_ptr.vmem [resolvable:$true] %s135_s25 }
   0x6   :  { %s160_s0 = scalar_lea.vmem %s136_s25, 1024  ;;  %p165_p1 = scmp.lt.s32.totalorder %s136_s25, %s136_s25 }
   0x7   :  { %p161_p0 = scmp.ne.s32.totalorder %s136_s25, %s160_s0  ;;  %p166_p2 = scmp.lt.s32.totalorder %s160_s0, %s160_s0 }
   0x8   :  { %146 = vmatmul.mubr.msk.f32.vlgmr.msra.gmra.mrb[0].mxu0 %vm20_vm0, %v12_v7  ;;  %148 = vmatmul.mubr.msk.f32.vlgmr.msra.gmra.mrb[0].mxu1 %vm20_vm0, %v14_v8 }
   0x9   :  { %103 = vmatprep.mubr.f32.mxu0 %v184_v5  ;;  %115 = vmatprep.mubr.f32.mxu1 %v184_v5  ;;  %p167_p3 = por %p166_p2, %p165_p1 }
   0xb   :  { %p168_p4 = pnand %p167_p3, %p161_p0 }
   0xc   :  { %147 = vmatmul.mubr.msk.f32.gmra.mrb[2].mxu0 %vm20_vm0, %v13_v9  ;;  %149 = vmatmul.mubr.msk.f32.gmra.mrb[2].mxu1 %vm20_vm0, %v15_v10 }
  0xdb   :  { %v99_v11 = vpop.f32.mrb[0].mxu0  ;;  %v111_v12 = vpop.f32.mrb[0].mxu1 }
  0xdc   :  { %122 = vst [vmem:[#allocation2] sm:$0xff] %v99_v11  ;;  %126 = vst [vmem:[#allocation2 + $0x20] sm:$0xff] %v111_v12  ;;  %v101_v13 = vpop.f32.mrb[1].mxu0  ;;  %v113_v14 = vpop.f32.mrb[1].mxu1 }
  0xdd   :  { %123 = vst [vmem:[#allocation2 + $0x8] sm:$0xff] %v101_v13  ;;  %127 = vst [vmem:[#allocation2 + $0x28] sm:$0xff] %v113_v14 }
  0xdf   :  { %v105_v15 = vpop.f32.mrb[2].mxu0  ;;  %v117_v16 = vpop.f32.mrb[2].mxu1 }
  0xe0   :  { %124 = vst [vmem:[#allocation2 + $0x10] sm:$0xff] %v105_v15  ;;  %128 = vst [vmem:[#allocation2 + $0x30] sm:$0xff] %v117_v16  ;;  %v107_v17 = vpop.f32.mrb[3].mxu0  ;;  %v119_v18 = vpop.f32.mrb[3].mxu1 }
  0xe1   :  { %125 = vst [vmem:[#allocation2 + $0x18] sm:$0xff] %v107_v17  ;;  %129 = vst [vmem:[#allocation2 + $0x38] sm:$0xff] %v119_v18 }
  0xe2   :  { %171 = shalt.err (!%p168_p4)
}
  0xe3   :  { %s172_s28 = scalar_lea.hbm %s241_s2, 1024 }
  0xe4   :  { %p173_p5 = scmp.ne.s32.totalorder %s241_s2, %s172_s28  ;;  %p176_p6 = scmp.lt.u32.totalorder %s172_s28, %s241_s2 }
  0xe6   :  { %p178_p7 = pnand %p176_p6, %p173_p5 }
  0xe8   :  { %181 = shalt.err (!%p178_p7)
}
  0xe9   :  { %s186_s5 = smov 256   ;;  %s187_s6 = smov 16  }
  0xea   :  { %141 = dma.vmem_to_hbm [thread:$0]  %s136_s25, 1024, %s241_s2, [#allocation3], %s186_s5, %s186_s5, %s187_s6  }
  0xeb   :  { %182 = dma.done.wait [#allocation3], 1024  }
  0xec   :  { %183 = vsyncadd [#allocation3], 4294966272 }
  0xed   :  { %145 = vsyncpa [#allocation3], 1 }

</bundles_post_ra>
